<compile_context>
chip_gen: v5e
topology: v5e:2x2
jax: 0.10.0
libtpu: 0.0.40
codegen_flags: <defaults>
</compile_context>

<pallas_src>
from functools import partial

import jax
import jax.numpy as jnp
from jax.experimental import pallas as pl
from jax.experimental.pallas import tpu as pltpu


# ----------------------------------------------------------------------------
# Kernels
# ----------------------------------------------------------------------------
def _embed_kernel(patches_ref, wp_ref, prefix_ref, g_ref, b_ref, o_ref):
    """Patch embedding (conv1 as matmul) + cls token + pos embedding + ln_pre
    for one batch element.  `prefix` already contains cls+pos[0] in row 0,
    pos[1:] in the patch rows and zeros in the padding rows, so a single
    aligned full-block store suffices."""
    emb = jnp.dot(patches_ref[...], wp_ref[...],
                  preferred_element_type=jnp.float32) + prefix_ref[...]
    m = jnp.mean(emb, axis=-1, keepdims=True)
    v = jnp.mean(jnp.square(emb - m), axis=-1, keepdims=True)
    o_ref[...] = ((emb - m) * jax.lax.rsqrt(v + 1e-5)
                  * g_ref[...] + b_ref[...]).astype(o_ref.dtype)


def _layers_kernel(x_ref,
                   ln1_g_ref, ln1_b_ref,
                   wqkv_ref, bqkv_ref,
                   wout_ref, bout_ref,
                   ln2_g_ref, ln2_b_ref,
                   wfc_ref, bfc_ref,
                   wproj_ref, bproj_ref,
                   o_ref, res_ref,
                   *, n_head, n_tok):
    """All ResidualAttentionBlocks fused.  grid=(B//BT, L); the fp32 residual
    stream stays resident in `res_ref` (VMEM scratch) across the layer axis and
    is written to the output once, at the last layer."""
    l = pl.program_id(1)

    @pl.when(l == 0)
    def _():
        res_ref[...] = x_ref[...].astype(jnp.float32)   # seed residual with ln_pre output

    x = res_ref[...]                      # [BT, N, D] fp32
    BT, N, D = x.shape
    H = n_head
    hd = D // H
    rows = BT * N

    def ln(z, g, b):
        m = jnp.mean(z, axis=-1, keepdims=True)
        var = jnp.mean(jnp.square(z - m), axis=-1, keepdims=True)
        return (z - m) * jax.lax.rsqrt(var + 1e-5) * g + b

    # ---- multi-head self-attention ------------------------------------------
    h = ln(x, ln1_g_ref[...], ln1_b_ref[...]).astype(jnp.bfloat16).reshape(rows, D)
    # one full-K, lane-dense QKV projection (q columns pre-scaled by 1/sqrt(hd))
    qkv = jnp.dot(h, wqkv_ref[...],
                  preferred_element_type=jnp.float32) + bqkv_ref[...]        # [rows, 3D]

    ctx_rows = []
    for b in range(BT):                            # static unroll, BT small
        r0 = b * N

        def heads(base, _r0=r0):
            return jnp.stack(
                [qkv[_r0:_r0 + N, base + hh * hd: base + (hh + 1) * hd]
                 for hh in range(H)], axis=0).astype(jnp.bfloat16)           # [H, N, hd]

        qh = heads(0)
        kh = heads(D)
        vh = heads(2 * D)

        s = jax.lax.dot_general(qh, kh, (((2,), (2,)), ((0,), (0,))),
                                preferred_element_type=jnp.float32)          # [H, N, N]
        if n_tok < N:                              # mask padded key positions
            key_ok = jax.lax.broadcasted_iota(jnp.int32, (1, 1, N), 2) < n_tok
            s = jnp.where(key_ok, s, -1e30)
        s = s - jnp.max(s, axis=-1, keepdims=True)
        p = jnp.exp(s)
        p = p * pl.reciprocal(jnp.sum(p, axis=-1, keepdims=True), approx=True)

        ctx = jax.lax.dot_general(p.astype(jnp.bfloat16), vh,
                                  (((2,), (1,)), ((0,), (0,))),
                                  preferred_element_type=jnp.float32)        # [H, N, hd]
        ctx_rows.append(jnp.concatenate([ctx[hh] for hh in range(H)], axis=-1))  # [N, D]

    ctx_all = jnp.concatenate(ctx_rows, axis=0)                              # [rows, D]
    # single K=D out-projection (== concat(heads) @ W_out)
    attn = jnp.dot(ctx_all.astype(jnp.bfloat16), wout_ref[...],
                   preferred_element_type=jnp.float32) + bout_ref[...]       # [rows, D]
    x = x + attn.reshape(BT, N, D)

    # ---- MLP: Linear(D->4D) -> QuickGELU -> Linear(4D->D) -------------------
    h2 = ln(x, ln2_g_ref[...], ln2_b_ref[...]).astype(jnp.bfloat16).reshape(rows, D)
    f = jnp.dot(h2, wfc_ref[...],
                preferred_element_type=jnp.float32) + bfc_ref[...]           # [rows, 4D]
    f = f * jax.nn.sigmoid(1.702 * f)
    mlp_out = jnp.dot(f.astype(jnp.bfloat16), wproj_ref[...],
                      preferred_element_type=jnp.float32) + bproj_ref[...]   # [rows, D]
    x = x + mlp_out.reshape(BT, N, D)

    res_ref[...] = x

    @pl.when(l == pl.num_programs(1) - 1)
    def _():
        o_ref[...] = x.astype(o_ref.dtype)


def _head_kernel(x_ref, g_ref, b_ref, proj_ref, o_ref):
    """ln_post on the CLS token followed by the (lane-padded) output projection."""
    x = x_ref[...]                                            # [B, D] f32
    m = jnp.mean(x, axis=-1, keepdims=True)
    v = jnp.mean(jnp.square(x - m), axis=-1, keepdims=True)
    xn = (x - m) * jax.lax.rsqrt(v + 1e-5) * g_ref[...] + b_ref[...]
    o_ref[...] = jnp.dot(xn.astype(jnp.bfloat16), proj_ref[...],
                         preferred_element_type=jnp.float32)


# ----------------------------------------------------------------------------
# pallas_call wrappers
# ----------------------------------------------------------------------------
def embed(patches, wp, prefix, g, b):
    B, N, K = patches.shape
    D = wp.shape[1]
    return pl.pallas_call(
        _embed_kernel,
        out_shape=jax.ShapeDtypeStruct((B, N, D), jnp.bfloat16),
        grid=(B,),
        in_specs=[pl.BlockSpec((None, N, K), lambda i: (i, 0, 0)),
                  pl.BlockSpec((K, D), lambda i: (0, 0)),
                  pl.BlockSpec((N, D), lambda i: (0, 0)),
                  pl.BlockSpec((1, D), lambda i: (0, 0)),
                  pl.BlockSpec((1, D), lambda i: (0, 0))],
        out_specs=pl.BlockSpec((None, N, D), lambda i: (i, 0, 0)),
        compiler_params=pltpu.CompilerParams(dimension_semantics=("parallel",)),
    )(patches, wp, prefix, g, b)


def transformer_layers(x, blocks, n_head, n_tok):
    B, N, D = x.shape
    L = blocks['ln1_g'].shape[0]

    weights = [blocks['ln1_g'], blocks['ln1_b'],
               blocks['wqkv'], blocks['bqkv'],
               blocks['wout'], blocks['bout'],
               blocks['ln2_g'], blocks['ln2_b'],
               blocks['wfc'], blocks['bfc'],
               blocks['wproj'], blocks['bproj']]

    # Batch block size: enough rows per step to amortize the per-layer weight
    # DMA, but a divisor of B and a short static unroll.
    # TODO(synk): on v7x keep B//bt >= 2 so both TensorCores get a parallel block.
    target_rows = 512
    max_bt = max(1, min(8, target_rows // max(N, 1)))
    bt = 1
    for cand in range(min(B, max_bt), 0, -1):
        if B % cand == 0:
            bt = cand
            break

    def wspec(w):
        nd = w.ndim
        # leading L axis squeezed out of the kernel view; indexed by the layer grid axis
        return pl.BlockSpec((None,) + tuple(w.shape[1:]),
                            lambda bi, li, _nd=nd: (li,) + (0,) * (_nd - 1))

    in_specs = ([pl.BlockSpec((bt, N, D), lambda bi, li: (bi, 0, 0))]
                + [wspec(w) for w in weights])
    out_spec = pl.BlockSpec((bt, N, D), lambda bi, li: (bi, 0, 0))

    # Generation-aware VMEM budget: double-buffered per-layer weights +
    # activation blocks + resident fp32 scratch + fp32 intermediates.
    try:
        info = pltpu.get_tpu_info()
        vmem_cap = int(getattr(info, "vmem_capacity_bytes", 64 * 1024 * 1024))
    except Exception:  # not on TPU / info unavailable -> conservative (v7x) cap
        vmem_cap = 64 * 1024 * 1024
    cap = int(vmem_cap * 0.85)

    w_bytes_total = sum(int(w.nbytes) for w in weights)
    per_layer_w = w_bytes_total // L
    rows = bt * N
    act_in = rows * D * x.dtype.itemsize
    act_out = rows * D * 4
    scratch_bytes = rows * D * 4
    inter_bytes = 4 * (rows * 3 * D            # qkv (f32)
                       + 2 * n_head * N * N    # s, p (per-sample live)
                       + rows * D              # ctx_all / attn
                       + 2 * rows * 4 * D)     # MLP hidden (f32)
    need = 2 * per_layer_w + 2 * (act_in + act_out) + scratch_bytes + inter_bytes + (4 << 20)
    vmem_limit = int(min(cap, max(need, 32 << 20)))

    flops_layer = 24 * N * D * D + 4 * N * N * D          # per sample
    cost = pl.CostEstimate(
        flops=int(B * L * flops_layer),
        transcendentals=int(B * L * (n_head * N * N + 4 * N * D)),
        bytes_accessed=int((B // bt) * w_bytes_total + int(x.nbytes) + B * N * D * 4),
    )

    return pl.pallas_call(
        partial(_layers_kernel, n_head=n_head, n_tok=n_tok),
        out_shape=jax.ShapeDtypeStruct((B, N, D), jnp.float32),
        grid=(B // bt, L),
        in_specs=in_specs,
        out_specs=out_spec,
        scratch_shapes=[pltpu.VMEM((bt, N, D), jnp.float32)],
        compiler_params=pltpu.CompilerParams(
            dimension_semantics=("parallel", "arbitrary"),
            vmem_limit_bytes=vmem_limit),
        cost_estimate=cost,
    )(x, *weights)


def head(x_cls, g, b, proj):
    B, D = x_cls.shape
    O = proj.shape[1]
    return pl.pallas_call(
        _head_kernel,
        out_shape=jax.ShapeDtypeStruct((B, O), jnp.float32),
        grid=(1,),
        in_specs=[pl.BlockSpec((B, D), lambda i: (0, 0)),
                  pl.BlockSpec((1, D), lambda i: (0, 0)),
                  pl.BlockSpec((1, D), lambda i: (0, 0)),
                  pl.BlockSpec((D, O), lambda i: (0, 0))],
        out_specs=pl.BlockSpec((B, O), lambda i: (0, 0)),
    )(x_cls, g, b, proj)


# ----------------------------------------------------------------------------
# Parameter init + host-side packing (deterministic; shapes follow
# DepthTransformer.__init__; QKV packed, attention scale folded into Q)
# ----------------------------------------------------------------------------
def init_params(key, width, layers, heads, patch_size, n_patches, output_dim):
    D = width
    hd = D // heads
    L = layers
    scale = D ** (-0.5)
    q_scale = hd ** (-0.5)
    n_tok = n_patches + 1
    n_pad = max(16, ((n_tok + 15) // 16) * 16)     # sublane-dense token count
    o_pad = ((output_dim + 127) // 128) * 128      # lane-dense output projection
    K = 3 * patch_size * patch_size

    keys = jax.random.split(key, 5)

    def nrm(k, shape, s=0.02):
        return s * jax.random.normal(k, shape, jnp.float32)

    conv_w = nrm(keys[0], (D, 3, patch_size, patch_size))
    cls = scale * jax.random.normal(keys[1], (D,), jnp.float32)
    pos = scale * jax.random.normal(keys[2], (n_tok, D), jnp.float32)
    proj = scale * jax.random.normal(keys[3], (D, output_dim), jnp.float32)

    # host-side packing (one-time parameter transforms)
    wp = conv_w.reshape(D, K).T.astype(jnp.bfloat16)                    # [K, D]
    prefix = jnp.zeros((n_pad, D), jnp.float32)
    prefix = prefix.at[0].set(cls + pos[0]).at[1:n_tok].set(pos[1:])
    proj_pad = jnp.zeros((D, o_pad), jnp.bfloat16).at[:, :output_dim].set(
        proj.astype(jnp.bfloat16))

    ks = jax.random.split(keys[4], 8)
    wqkv = nrm(ks[0], (L, D, 3 * D))
    bqkv = nrm(ks[1], (L, 1, 3 * D))
    # fold 1/sqrt(hd) attention scale into the Q projection columns
    qcols = jnp.concatenate([jnp.full((D,), q_scale, jnp.float32),
                             jnp.ones((2 * D,), jnp.float32)])
    wqkv = (wqkv * qcols).astype(jnp.bfloat16)
    bqkv = bqkv * qcols

    blocks = {
        'ln1_g': jnp.ones((L, 1, D), jnp.float32),
        'ln1_b': jnp.zeros((L, 1, D), jnp.float32),
        'wqkv': wqkv,                                   # [L, D, 3D] bf16
        'bqkv': bqkv,                                   # [L, 1, 3D] f32
        'wout': nrm(ks[2], (L, D, D)).astype(jnp.bfloat16),
        'bout': nrm(ks[3], (L, 1, D)),
        'ln2_g': jnp.ones((L, 1, D), jnp.float32),
        'ln2_b': jnp.zeros((L, 1, D), jnp.float32),
        'wfc': nrm(ks[4], (L, D, 4 * D)).astype(jnp.bfloat16),
        'bfc': nrm(ks[5], (L, 1, 4 * D)),
        'wproj': nrm(ks[6], (L, 4 * D, D)).astype(jnp.bfloat16),
        'bproj': nrm(ks[7], (L, 1, D)),
    }

    return {
        'wp': wp, 'prefix': prefix, 'proj_pad': proj_pad,
        'ln_pre_g': jnp.ones((1, D), jnp.float32),
        'ln_pre_b': jnp.zeros((1, D), jnp.float32),
        'ln_post_g': jnp.ones((1, D), jnp.float32),
        'ln_post_b': jnp.zeros((1, D), jnp.float32),
        'blocks': blocks,
        'output_dim': output_dim,
    }


# ----------------------------------------------------------------------------
# Forward pass (Pallas kernels for the hot path, tiny JAX glue for patchify)
# ----------------------------------------------------------------------------
def depth_transformer_forward(x, params, *, patch_size, heads):
    B, C, H, W = x.shape
    ps = patch_size
    gh, gw = H // ps, W // ps
    n_patch = gh * gw
    n_tok = n_patch + 1
    n_pad = params['prefix'].shape[0]
    K = C * ps * ps

    # conv1 (stride == kernel) == patchify (glue) + matmul (in-kernel).
    # Row 0 is the CLS slot (zero patch row), rows >= n_tok are sublane padding.
    patches = (x.reshape(B, C, gh, ps, gw, ps)
                 .transpose(0, 2, 4, 1, 3, 5)
                 .reshape(B, n_patch, K)).astype(jnp.bfloat16)
    patches_pad = jnp.zeros((B, n_pad, K), jnp.bfloat16).at[:, 1:n_tok, :].set(patches)

    # patch embed + cls + pos + ln_pre, fused; single aligned full-block store
    seq = embed(patches_pad, params['wp'], params['prefix'],
                params['ln_pre_g'], params['ln_pre_b'])

    # all residual attention blocks in a single fused pallas_call
    seq = transformer_layers(seq, params['blocks'], heads, n_tok=n_tok)

    # ln_post on the CLS token + output projection (lane-padded, sliced back)
    out = head(seq[:, 0, :], params['ln_post_g'], params['ln_post_b'],
               params['proj_pad'])
    return out[:, :params['output_dim']]


# ----------------------------------------------------------------------------
if __name__ == "__main__":
    # Small config: input_resolution=16, patch_size=8, width=32, layers=2,
    # heads=4, output_dim=16, batch=2.
    input_resolution, patch_size = 16, 8
    width, layers, heads, output_dim = 32, 2, 4, 16
    batch = 2
    n_patches = (input_resolution // patch_size) ** 2

    key = jax.random.PRNGKey(0)
    k_x, k_p = jax.random.split(key)
    x = jax.random.normal(k_x, (batch, 3, input_resolution, input_resolution), jnp.float32)
    params = init_params(k_p, width, layers, heads, patch_size, n_patches, output_dim)

    out = depth_transformer_forward(x, params, patch_size=patch_size, heads=heads)
    jax.block_until_ready(out)
    assert out.shape == (batch, output_dim), out.shape
    print("KERNEL_OK")
</pallas_src>

<mosaic_0001>
module attributes {stable_mosaic.version = 11 : i64} {
  func.func @_embed_kernel(%arg0: i32, %arg1: memref<1x16x192xbf16, #tpu.memory_space<vmem>>, %arg2: memref<192x32xbf16, #tpu.memory_space<vmem>>, %arg3: memref<16x32xf32, #tpu.memory_space<vmem>>, %arg4: memref<1x32xf32, #tpu.memory_space<vmem>>, %arg5: memref<1x32xf32, #tpu.memory_space<vmem>>, %arg6: memref<1x16x32xbf16, #tpu.memory_space<vmem>>) attributes {dimension_semantics = [#tpu.dimension_semantics<parallel>], iteration_bounds = array<i64: 2>, scalar_prefetch = 0 : i64, scratch_operands = 0 : i64, tpu.core_type = #tpu.core_type<tc>, window_params = [{transform_indices = @transform_0, window_bounds = array<i64: 1, 16, 192>}, {pipeline_mode = #tpu.pipeline_mode<synchronous>, transform_indices = @transform_1, window_bounds = array<i64: 192, 32>}, {pipeline_mode = #tpu.pipeline_mode<synchronous>, transform_indices = @transform_2, window_bounds = array<i64: 16, 32>}, {pipeline_mode = #tpu.pipeline_mode<synchronous>, transform_indices = @transform_3, window_bounds = array<i64: 1, 32>}, {pipeline_mode = #tpu.pipeline_mode<synchronous>, transform_indices = @transform_4, window_bounds = array<i64: 1, 32>}, {transform_indices = @transform_5, window_bounds = array<i64: 1, 16, 32>}]} {
    %c0 = arith.constant 0 : index
    %c0_0 = arith.constant 0 : index
    %c0_1 = arith.constant 0 : index
    %0 = vector.load %arg1[%c0, %c0_0, %c0_1] : memref<1x16x192xbf16, #tpu.memory_space<vmem>>, vector<1x16x192xbf16>
    %1 = vector.shape_cast %0 : vector<1x16x192xbf16> to vector<16x192xbf16>
    %c0_2 = arith.constant 0 : index
    %c0_3 = arith.constant 0 : index
    %2 = vector.load %arg2[%c0_2, %c0_3] : memref<192x32xbf16, #tpu.memory_space<vmem>>, vector<192x32xbf16>
    %cst = arith.constant dense<0.000000e+00> : vector<16x32xf32>
    %3 = tpu.matmul %1, %2, %cst {dimension_numbers = #tpu.dot_dimension_numbers<[1], [0], [0], [1], [0, 0, 1, 1], [], []>} : vector<16x192xbf16>, vector<192x32xbf16>, vector<16x32xf32> -> vector<16x32xf32>
    %c0_4 = arith.constant 0 : index
    %c0_5 = arith.constant 0 : index
    %4 = vector.load %arg3[%c0_4, %c0_5] : memref<16x32xf32, #tpu.memory_space<vmem>>, vector<16x32xf32>
    %5 = arith.addf %3, %4 : vector<16x32xf32>
    %cst_6 = arith.constant dense<0.000000e+00> : vector<16xf32>
    %6 = vector.multi_reduction <add>, %5, %cst_6 [1] : vector<16x32xf32> to vector<16xf32>
    %7 = vector.shape_cast %6 : vector<16xf32> to vector<16x1xf32>
    %cst_7 = arith.constant 3.200000e+01 : f32
    %8 = vector.broadcast %cst_7 : f32 to vector<16x1xf32>
    %9 = arith.divf %7, %8 : vector<16x1xf32>
    %10 = vector.broadcast %9 : vector<16x1xf32> to vector<16x32xf32>
    %11 = arith.subf %5, %10 : vector<16x32xf32>
    %12 = arith.mulf %11, %11 : vector<16x32xf32>
    %cst_8 = arith.constant dense<0.000000e+00> : vector<16xf32>
    %13 = vector.multi_reduction <add>, %12, %cst_8 [1] : vector<16x32xf32> to vector<16xf32>
    %14 = vector.shape_cast %13 : vector<16xf32> to vector<16x1xf32>
    %cst_9 = arith.constant 3.200000e+01 : f32
    %15 = vector.broadcast %cst_9 : f32 to vector<16x1xf32>
    %16 = arith.divf %14, %15 : vector<16x1xf32>
    %17 = vector.broadcast %9 : vector<16x1xf32> to vector<16x32xf32>
    %18 = arith.subf %5, %17 : vector<16x32xf32>
    %cst_10 = arith.constant 9.99999974E-6 : f32
    %19 = vector.broadcast %cst_10 : f32 to vector<16x1xf32>
    %20 = arith.addf %16, %19 : vector<16x1xf32>
    %21 = math.rsqrt %20 : vector<16x1xf32>
    %22 = vector.broadcast %21 : vector<16x1xf32> to vector<16x32xf32>
    %23 = arith.mulf %18, %22 : vector<16x32xf32>
    %c0_11 = arith.constant 0 : index
    %c0_12 = arith.constant 0 : index
    %24 = vector.load %arg4[%c0_11, %c0_12] : memref<1x32xf32, #tpu.memory_space<vmem>>, vector<1x32xf32>
    %25 = vector.broadcast %24 : vector<1x32xf32> to vector<16x32xf32>
    %26 = arith.mulf %23, %25 : vector<16x32xf32>
    %c0_13 = arith.constant 0 : index
    %c0_14 = arith.constant 0 : index
    %27 = vector.load %arg5[%c0_13, %c0_14] : memref<1x32xf32, #tpu.memory_space<vmem>>, vector<1x32xf32>
    %28 = vector.broadcast %27 : vector<1x32xf32> to vector<16x32xf32>
    %29 = arith.addf %26, %28 : vector<16x32xf32>
    %30 = arith.truncf %29 : vector<16x32xf32> to vector<16x32xbf16>
    %c0_15 = arith.constant 0 : index
    %c0_16 = arith.constant 0 : index
    %c0_17 = arith.constant 0 : index
    %31 = vector.load %arg6[%c0_15, %c0_16, %c0_17] : memref<1x16x32xbf16, #tpu.memory_space<vmem>>, vector<1x16x32xbf16>
    %32 = vector.shape_cast %31 : vector<1x16x32xbf16> to vector<16x32xbf16>
    %33 = vector.shape_cast %30 : vector<16x32xbf16> to vector<1x16x32xbf16>
    tpu.vector_store %arg6[%c0_15, %c0_16, %c0_17], %33 {strides = array<i32>} : memref<1x16x32xbf16, #tpu.memory_space<vmem>>, vector<1x16x32xbf16>,
    return
  }
  func.func @transform_0(%arg0: i32) -> (i32, i32, i32) {
    %c0_i32 = arith.constant 0 : i32
    %c0_i32_0 = arith.constant 0 : i32
    %c0_i32_1 = arith.constant 0 : i32
    return %arg0, %c0_i32, %c0_i32_0 : i32, i32, i32
  }
  func.func @transform_1(%arg0: i32) -> (i32, i32) {
    %c0_i32 = arith.constant 0 : i32
    %c0_i32_0 = arith.constant 0 : i32
    %c0_i32_1 = arith.constant 0 : i32
    return %c0_i32, %c0_i32_0 : i32, i32
  }
  func.func @transform_2(%arg0: i32) -> (i32, i32) {
    %c0_i32 = arith.constant 0 : i32
    %c0_i32_0 = arith.constant 0 : i32
    %c0_i32_1 = arith.constant 0 : i32
    return %c0_i32, %c0_i32_0 : i32, i32
  }
  func.func @transform_3(%arg0: i32) -> (i32, i32) {
    %c0_i32 = arith.constant 0 : i32
    %c0_i32_0 = arith.constant 0 : i32
    %c0_i32_1 = arith.constant 0 : i32
    return %c0_i32, %c0_i32_0 : i32, i32
  }
  func.func @transform_4(%arg0: i32) -> (i32, i32) {
    %c0_i32 = arith.constant 0 : i32
    %c0_i32_0 = arith.constant 0 : i32
    %c0_i32_1 = arith.constant 0 : i32
    return %c0_i32, %c0_i32_0 : i32, i32
  }
  func.func @transform_5(%arg0: i32) -> (i32, i32, i32) {
    %c0_i32 = arith.constant 0 : i32
    %c0_i32_0 = arith.constant 0 : i32
    %c0_i32_1 = arith.constant 0 : i32
    return %arg0, %c0_i32, %c0_i32_0 : i32, i32, i32
  }
}

</mosaic_0001>

<bundles_post_ra>
// kernel: tpu_custom_call.1
= control target key start
LH: loop header
LB: loop body
LE: loop exit
PB: predicated region body
PF: predicated region fallthrough
CT: control target
= control target key end

     0   :  { %10 = vsyncpa [#allocation3], 0  ;;  %s881_s0 = inlined_call_operand.vmem [shape: bf16[2,16,192], index: 0, kind: input, shape index: {}]   ;;  %s882_s1 = inlined_call_operand.vmem [shape: bf16[192,32], index: 1, kind: input, shape index: {}]   ;;  %s883_s2 = inlined_call_operand.vmem [shape: f32[16,32], index: 2, kind: input, shape index: {}]   ;;  %s884_s3 = inlined_call_operand.vmem [shape: f32[1,32], index: 3, kind: input, shape index: {}]   ;;  %s885_s4 = inlined_call_operand.vmem [shape: f32[1,32], index: 4, kind: input, shape index: {}]   ;;  %s886_s5 = inlined_call_operand.hbm [shape: bf16[2,16,32], index: 5, kind: output, shape index: {}]  }
   0x1   :  { %12 = vsyncpa [#allocation3 + $0x1], 0  ;;  %s744_s18 = smov 0   ;;  %s746_s19 = smov 0  }
   0x2   :  { %s748_s20 = smov 0   ;;  %s750_s21 = smov 0  }
   0x3 LB: > { %s765_s22 = sadd.s32 4294967295, %s709_s21   ;;  %s512_s23 = sadd.s32 4294967294, %s709_s21   ;;  %s709_s21 = sphi %s750_s21, %s892_s21   ;;  %s705_s20 = sphi %s748_s20, %s891_s20   ;;  %s701_s19 = sphi %s746_s19, %s890_s19   ;;  %s697_s18 = sphi %s744_s18, %s889_s18  }
   0x4   : > { %s769_s24 = sadd.s32 1, %s709_s21   ;;  %s135_s25 = sadd.s32 1, %s705_s20 }
   0x5   : > { %s132_s26 = ssub.s32 %s709_s21, %s769_s24  ;;  %p145_p0 = scmp.ne.s32.totalorder %s705_s20, %s701_s19 }
   0x6   : > { %p133_p1 = scmp.eq.s32.totalorder %s132_s26, 0  ;;  %p146_p2 = scmp.eq.s32.totalorder %s765_s22, 1 }
   0x7   : > { %p151_p3 = scmp.ne.s32.totalorder %s701_s19, %s697_s18  ;;  %p152_p4 = scmp.eq.s32.totalorder %s512_s23, 1 }
   0x8   : > { %s780_s27 = scalar_select %p133_p1, %s705_s20, %s135_s25  }
   0x9   : > { %p782_p5 = por %p146_p2, %p145_p0  ;;  %p786_p6 = por %p152_p4, %p151_p3 }
   0xa   : > { %p515_p7 = scmp.ge.s32.totalorder %s709_s21, 1  ;;  %p190_p8 = scmp.lt.s32.totalorder %s709_s21, 3 }
   0xc   : > { %p191_p9 = pnand %p515_p7, %p190_p8 }
   0xd   : > { %p218_p10 = scmp.lt.s32.totalorder (!%p191_p9), %s765_s22, 1  ;;  %s215_s8 = sand.u32 (!%p191_p9), 1, %s701_s19  }
   0xe   : > { %194 = sbr.rel (%p191_p9) target bundleno = 463 (0x1cf), region = 40  ;;  %s596_s12 = sshll.u32 (!%p191_p9), %s765_s22, 3 }
   0xf   : > { %s446_s15 = scalar_lea.hbm (!%p191_p9), %s886_s5, %s596_s12  ;;  %s667_s7 = scalar_lea.hbm (!%p191_p9), %s886_s5, 16 }
  0x10   : > { %s449_s23 = sshll.u32 (!%p191_p9), %s446_s15, 4  ;;  %s450_s23 = int_to_ptr.hbm [resolvable:$true] %s449_s23 }
  0x11   : > { %s661_s25 = sshra.s32 (!%p191_p9), %s450_s23, 4  ;;  %s662_s25 = int_to_ptr.hbm [resolvable:$true] %s661_s25 }
  0x12   : > { %s663_s26 = scalar_lea.hbm (!%p191_p9), %s662_s25, 8  ;;  %p668_p0 = scmp.lt.s32.totalorder (!%p191_p9), %s662_s25, %s886_s5 }
  0x13   : > { %v591_v0 = vld [vmem:[%s882_s1 + $0x38] sm:$0xff]  ;;  %v590_v2 = vld [vmem:[%s882_s1 + $0x30] sm:$0xff]  ;;  %s219_s11 = scalar_select %p218_p10, %s765_s22, 1  ;;  %v589_v4 = vld [vmem:[%s882_s1 + $0x28] sm:$0xff]  ;;  %vm333_vm0 = vcmask 523264   ;;  %vm365_vm1 = vcmask 261120  }
  0x14   : > { %v595_v1 = vld [vmem:[%s882_s1 + $0x58] sm:$0xff]  ;;  %337 = vmatpush.bf16.msra.mxu0 %v591_v0  ;;  %v594_v3 = vld [vmem:[%s882_s1 + $0x50] sm:$0xff]  ;;  %v593_v5 = vld [vmem:[%s882_s1 + $0x48] sm:$0xff]  ;;  %v711_v30 = vmov 32.0   ;;  %vm431_vm8 = vcmask 257024   ;;  %s435_s22 = scalar_lea.sflag [#allocation3], %s215_s8  ;;  %p664_p11 = scmp.ne.s32.totalorder %s662_s25, %s663_s26 }
  0x15   : > { %355 = vmatpush.bf16.msra.mxu1 %v595_v1  ;;  %s581_s14 = sshll.u32 %s219_s11, 4  ;;  %v588_v6 = vld [vmem:[%s882_s1 + $0x20] sm:$0xff]  ;;  %v587_v10 = vld [vmem:[%s882_s1 + $0x18] sm:$0xff]  ;;  %v586_v12 = vld [vmem:[%s882_s1 + $0x10] sm:$0xff]  ;;  %641 = vrcp.f32 %v711_v30  ;;  %s516_s11 = sshll.u32 %s215_s8, 3 }
  0x16   : > { %s222_s30 = scalar_lea.vmem %s881_s0, %s581_s14  ;;  %v592_v7 = vld [vmem:[%s882_s1 + $0x40] sm:$0xff]  ;;  %v585_v13 = vld [vmem:[%s882_s1 + $0x8] sm:$0xff]  ;;  %s217_s16 = scalar_lea.vmem [#allocation2], %s516_s11 }
  0x17   : > { %v582_v8 = vld [vmem:[%s222_s30 + $0x4] sm:$0xf]  ;;  %v523_v9 = vld [vmem:[%s222_s30 + $0x8] sm:$0xf0]  ;;  %v521_v15 = vld [vmem:[%s222_s30] sm:$0xf]  ;;  %p665_p12 = pnand %p664_p11, %p782_p5  ;;  %p669_p1 = scmp.lt.s32.totalorder %s667_s7, %s663_s26 }
  0x18   : > { %338 = vmatpush.bf16.msra.mxu0 %v590_v2  ;;  %v526_v11 = vor.u32 %v582_v8, %v523_v9  ;;  %v584_v14 = vld [vmem:[%s882_s1] sm:$0xff]  ;;  %v583_v16 = vld [vmem:[%s222_s30 + $0x4] sm:$0xf0]  ;;  %s447_s17 = sshll.u32 %s217_s16, 4  ;;  %s448_s17 = int_to_ptr.vmem [resolvable:$true] %s447_s17 }
  0x19   : > { %356 = vmatpush.bf16.msra.mxu1 %v594_v3  ;;  %v522_v17 = vor.u32 %v583_v16, %v521_v15  ;;  %v250_v18 = vld [vmem:[%s883_s2] sm:$0xff]  ;;  %v251_v24 = vld [vmem:[%s883_s2 + $0x8] sm:$0xff]  ;;  %p666_p13 = pneg %p665_p12  ;;  %p670_p2 = por %p669_p1, %p668_p0 }
  0x1a   : > { %v639_v61 = vld [vmem:[%s884_s3] ss:$0 sm:$0xff] }
  0x1b   : > { %v642_v31 = vpop.eup %641  ;;  %v640_v0 = vld [vmem:[%s885_s4] ss:$0 sm:$0xff]  ;;  %p671_p3 = pnand %p670_p2, %p666_p13 }
  0x1c   : > { %339 = vmatpush.bf16.msra.mxu0 %v589_v4  ;;  %v373_v32 = vmul.f32 32.0, %v642_v31  ;;  %vm377_vm2 = vweird.f32 %v642_v31 }
  0x1d   : > { %357 = vmatpush.bf16.msra.mxu1 %v593_v5 }
  0x1e   : > { %v374_v33 = vsub.f32 1.0, %v373_v32 }
  0x20   : > { %340 = vmatpush.bf16.msra.mxu0 %v588_v6  ;;  %v375_v34 = vmul.f32 %v642_v31, %v374_v33 }
  0x21   : > { %358 = vmatpush.bf16.msra.mxu1 %v592_v7 }
  0x22   : > { %v376_v35 = vadd.f32 %v642_v31, %v375_v34 }
  0x24   : > { %341 = vmatpush.bf16.msra.mxu0 %v587_v10  ;;  %575 = vmatmul.msk.bf16.vlgmr.msra.gmra.mxu1 %vm333_vm0, %v526_v11  ;;  %v378_v36 = vsel %vm377_vm2, %v642_v31, %v376_v35 }
  0x28   : > { %342 = vmatpush.bf16.msra.mxu0 %v586_v12 }
  0x2c   : > { %343 = vmatpush.bf16.msra.mxu0 %v585_v13 }
  0x30   : > { %344 = vmatpush.bf16.msra.mxu0 %v584_v14 }
  0x33   : > { %345 = vmatmul.bf16.vlgmr.msra.gmra.mxu0 %v522_v17 }
  0xa1   : > { %v360_v19 = vpop.f32.mrf.mxu1 }
  0xa9   : > { %v362_v27 = vpop.f32.mrf.mxu1 }
  0xb0   : > { %v346_v20 = vpop.f32.mrf.mxu0 }
  0xb1   : > { %v347_v21 = vadd.f32 %v346_v20, %v250_v18 }
  0xb3   : > { %v361_v22 = vadd.f32 %v360_v19, %v347_v21 }
  0xb5   : > { %v366_v23 = vsel %vm365_vm1, %v361_v22, 0.0 }
  0xb6   : > { %367 = vadd.xlane.f32.xlu0 %v366_v23 }
  0xb8   : > { %v348_v25 = vpop.f32.mrf.mxu0 }
  0xb9   : > { %v349_v26 = vadd.f32 %v348_v25, %v251_v24 }
  0xbb   : > { %v363_v28 = vadd.f32 %v362_v27, %v349_v26 }
  0xbd   : > { %v369_v29 = vsel %vm365_vm1, %v363_v28, 0.0 }
  0xbe   : > { %370 = vadd.xlane.f32.xlu0 %v369_v29 }
 0x129   : > { %v368_v37 = vpop.xlane.xlu0 %367 }
 0x12a   : > { %v379_v38 = vmul.f32 %v378_v36, %v368_v37 }
 0x12c   : > { %v381_v39 = vsub.f32 %v361_v22, %v379_v38 }
 0x12e   : > { %v383_v40 = vmul.f32 %v381_v39, %v381_v39 }
 0x130   : > { %v385_v41 = vsel %vm365_vm1, %v383_v40, 0.0 }
 0x131   : > { %386 = vadd.xlane.f32.xlu1 %v385_v41  ;;  %v371_v42 = vpop.xlane.xlu0 %370 }
 0x132   : > { %v380_v43 = vmul.f32 %v378_v36, %v371_v42 }
 0x134   : > { %v382_v44 = vsub.f32 %v363_v28, %v380_v43 }
 0x136   : > { %v384_v45 = vmul.f32 %v382_v44, %v382_v44 }
 0x138   : > { %v388_v46 = vsel %vm365_vm1, %v384_v45, 0.0 }
 0x139   : > { %389 = vadd.xlane.f32.xlu1 %v388_v46 }
 0x1a4   : > { %v387_v47 = vpop.xlane.xlu1 %386 }
 0x1a5   : > { %v391_v48 = vmul.f32 %v387_v47, %v378_v36 }
 0x1a7   : > { %v393_v49 = vadd.f32 1e-05, %v391_v48 }
 0x1a9   : > { %643 = vrsqrt.f32 %v393_v49  ;;  %vm401_vm4 = vweird.f32 %v393_v49 }
 0x1ac   : > { %v390_v50 = vpop.xlane.xlu1 %389 }
 0x1ad   : > { %v392_v51 = vmul.f32 %v390_v50, %v378_v36 }
 0x1af   : > { %v644_v52 = vpop.eup %643  ;;  %v394_v53 = vadd.f32 1e-05, %v392_v51 }
 0x1b0   : > { %v396_v54 = vmul.f32 %v644_v52, %v393_v49  ;;  %vm402_vm3 = vweird.f32 %v644_v52 }
 0x1b1   : > { %645 = vrsqrt.f32 %v394_v53  ;;  %vm403_vm5 = vmor %vm401_vm4, %vm402_vm3  ;;  %vm411_vm7 = vweird.f32 %v394_v53 }
 0x1b2   : > { %v397_v55 = vmul.f32 %v644_v52, %v396_v54 }
 0x1b4   : > { %v398_v56 = vmul.f32 0.5, %v397_v55 }
 0x1b6   : > { %v399_v57 = vsub.f32 1.5, %v398_v56 }
 0x1b7   : > { %v646_v58 = vpop.eup %645 }
 0x1b8   : > { %v400_v59 = vmul.f32 %v644_v52, %v399_v57  ;;  %v406_v60 = vmul.f32 %v646_v58, %v394_v53  ;;  %vm412_vm6 = vweird.f32 %v646_v58 }
 0x1b9   : > { %vm413_vm9 = vmor %vm411_vm7, %vm412_vm6 }
 0x1ba   : > { %v404_v62 = vsel %vm403_vm5, %v644_v52, %v400_v59  ;;  %v407_v63 = vmul.f32 %v646_v58, %v406_v60 }
 0x1bb   : > { %v415_v1 = vmul.f32 %v404_v62, %v381_v39 }
 0x1bc   : > { %v408_v2 = vmul.f32 0.5, %v407_v63 }
 0x1bd   : > { %v421_v3 = vmul.f32 %v639_v61, %v415_v1 }
 0x1be   : > { %v409_v4 = vsub.f32 1.5, %v408_v2 }
 0x1bf   : > { %v427_v5 = vadd.f32 %v640_v0, %v421_v3 }
 0x1c0   : > { %v410_v6 = vmul.f32 %v646_v58, %v409_v4 }
 0x1c1   : > { %v429_v7 = vpack.c.bf16 %v427_v5, %v427_v5 }
 0x1c2   : > { %v414_v8 = vsel %vm413_vm9, %v646_v58, %v410_v6 }
 0x1c3   : > { %v416_v9 = vmul.f32 %v414_v8, %v382_v44  ;;  %432 = vst.msk [vmem:[%s217_s16] sm:$0xf] %vm431_vm8, %v429_v7 }
 0x1c5   : > { %v422_v10 = vmul.f32 %v639_v61, %v416_v9 }
 0x1c7   : > { %v428_v11 = vadd.f32 %v640_v0, %v422_v10 }
 0x1c9   : > { %v430_v12 = vpack.c.bf16 %v428_v11, %v428_v11 }
 0x1cb   : > { %433 = vst.msk [vmem:[%s217_s16 + $0x4] sm:$0xf] %vm431_vm8, %v430_v12 }
 0x1cc   : > { %674 = shalt.err (!%p671_p3)
}
 0x1cd   : > { %s712_s8 = smov 64   ;;  %s713_s11 = smov 4  }
 0x1ce   : > { %597 = dma.vmem_to_hbm [thread:$0]  (%p782_p5), %s448_s17, 128, %s450_s23, %s435_s22, %s712_s8, %s712_s8, %s713_s11  }
 0x1cf PF: > { %p603_p4 = scmp.ge.s32.totalorder %s709_s21, 2  ;;  %s464_s12 = sand.u32 1, %s697_s18  }
 0x1d0   : > { %s465_s13 = scalar_lea.sflag [#allocation3], %s464_s12 }
 0x1d1   : > { %p600_p7 = pnand %p603_p4, %p786_p6 }
 0x1d3   : > { %p601_p8 = pneg %p600_p7 }
 0x1d5   : > { %692 = dma.done.wait (%p601_p8), %s465_s13, 128  }
 0x1d6   : > { %694 = vsyncadd (%p601_p8), %s465_s13, 4294967168  ;;  %p15_p9 = scmp.ge.s32.totalorder %s769_s24, 4   ;;  %s889_s18 = smov %s701_s19 }
 0x1d7   : > { %s890_s19 = smov %s705_s20  ;;  %s891_s20 = smov %s780_s27 }
 0x1d8   : > { %s892_s21 = smov %s769_s24  ;;  %17 = sbr.rel (!%p15_p9) target bundleno = 3 (0x3), region = 75 }
 0x1dd   :  { %471 = vsyncpa [#allocation3], 1 }
 0x1de   :  { %473 = vsyncpa [#allocation3 + $0x1], 1 }

</bundles_post_ra>
